<compile_context>
chip_gen: v7x
topology: tpu7x:2x2x1
jax: 0.10.0
libtpu: 0.0.40
codegen_flags: <defaults>
</compile_context>

<pallas_src>
import functools

import jax
import jax.numpy as jnp
from jax import lax
from jax.experimental import pallas as pl
from jax.experimental.pallas import tpu as pltpu


# ------------------------- kernel -------------------------

def _polymax_kernel(x_ref, o_ref, *, x_intercept, y_intercept, power,
                    inv_divisor, compute_dtype):
    x = x_ref[...].astype(compute_dtype)

    m = y_intercept / x_intercept          # static python float (slope)

    # x**power only matters for x > 0; clamp so the pow path never sees a
    # negative base (avoids NaN in the masked-out branch).
    safe_x = jnp.maximum(x, 0.0)
    p = float(power)
    if p.is_integer():
        xpow = lax.integer_pow(safe_x, int(p))              # pure VPU multiplies
    elif (2.0 * p).is_integer() and p > 0.0:
        # half-integer power: x**(k+0.5) = x**k * sqrt(x) — 1 EUP op, no log+exp
        k = int(p)
        xpow = jnp.sqrt(safe_x)
        if k:
            xpow = xpow * lax.integer_pow(safe_x, k)
    else:
        xpow = jnp.power(safe_x, compute_dtype(p))          # EUP exp/log path

    out = jnp.where(
        x > 0.0,
        xpow + y_intercept,                                   # polynomial region
        jnp.where(x >= x_intercept, m * x + y_intercept,      # linear region
                  0.0),                                       # flat region (== 0)
    )
    # fold the divide into a static multiply (divisor is a config constant)
    o_ref[...] = (out * inv_divisor).astype(o_ref.dtype)


# ------------------------- wrapper -------------------------

def _round_up(a, b):
    return ((a + b - 1) // b) * b


def _chip_generation():
    try:
        kind = jax.devices()[0].device_kind.lower()
    except Exception:
        return "unknown"
    if "v5 lite" in kind or "v5e" in kind or "v5lite" in kind:
        return "v5e"
    if "v6" in kind:
        return "v6e"
    if "v7" in kind:
        return "v7x"
    return "unknown"


# per-grid-step tile bytes (single input tile); double-buffered in+out => 4x
_TILE_BYTES = {"v5e": 2 << 20, "v6e": 4 << 20, "v7x": 8 << 20, "unknown": 2 << 20}


def polymax(x, *, x_intercept, y_intercept, power, divisor, donate_input=False):
    """Elementwise Polymax. x: any-rank float array. Params: python floats."""
    assert x_intercept < 0, "polymax_x_intercept must be negative"
    assert divisor != 0.0

    orig_shape = x.shape
    orig_dtype = x.dtype
    n = x.size
    itemsize = jnp.dtype(orig_dtype).itemsize
    # native sublane multiple per packing: f32 -> 8, bf16 -> 16, int8/fp8 -> 32
    sub = {4: 8, 2: 16, 1: 32}.get(itemsize, 8)

    gen = _chip_generation()
    tile_bytes = _TILE_BYTES[gen]

    # ---- lane-dense layout, no pad/slice on the common path -----------------
    # Pick a lane width C (multiple of 128) that divides the element count so
    # the flatten is a free reshape (no extra HBM round trips through pad/slice).
    C = None
    for cand in (2048, 1024, 512, 256, 128):
        if n % cand == 0:
            C = cand
            break

    padded = C is None
    if padded:
        # Ragged total (not a multiple of 128): pad + slice fallback. The padded
        # elements land in the x==0 branch (-> y_intercept/divisor) and are
        # sliced off below, so they never leak into the result.
        C = 128
        rows = pl.cdiv(n, C)
        xf = jnp.pad(x.reshape(-1), (0, rows * C - n))
    else:
        rows = n // C
        xf = x.reshape(-1)                 # free reshape of a contiguous array
    x2 = xf.reshape(rows, C)

    # ---- row-tile selection --------------------------------------------------
    tr_cap = max(sub, (tile_bytes // (C * itemsize)) // sub * sub)
    if rows > tr_cap:
        tr = tr_cap
    elif rows >= 2 * sub:
        # keep at least two grid steps so ("parallel",) can use both v7x cores
        tr = _round_up(pl.cdiv(rows, 2), sub)
    else:
        tr = rows                          # tiny input: one full-extent block
    grid = (pl.cdiv(rows, tr),)            # ragged last block handled by Pallas

    # compute natively in bf16 on chips with bf16 VPU/EUP; otherwise in f32
    if orig_dtype == jnp.bfloat16 and gen in ("v6e", "v7x"):
        compute_dtype = jnp.bfloat16
    else:
        compute_dtype = jnp.float32

    kernel = functools.partial(
        _polymax_kernel,
        x_intercept=float(x_intercept),
        y_intercept=float(y_intercept),
        power=float(power),
        inv_divisor=1.0 / float(divisor),
        compute_dtype=compute_dtype,
    )

    cp_kwargs = {"dimension_semantics": ("parallel",)}
    if 4 * tr * C * itemsize > (24 << 20):   # double-buffered in + out footprint
        cp_kwargs["vmem_limit_bytes"] = 48 << 20

    out2 = pl.pallas_call(
        kernel,
        out_shape=jax.ShapeDtypeStruct((rows, C), orig_dtype),
        grid=grid,
        in_specs=[pl.BlockSpec((tr, C), lambda i: (i, 0))],
        out_specs=pl.BlockSpec((tr, C), lambda i: (i, 0)),
        input_output_aliases={0: 0} if donate_input else {},
        compiler_params=pltpu.CompilerParams(**cp_kwargs),
    )(x2)

    out = out2.reshape(-1)
    if padded:
        out = out[:n]
    return out.reshape(orig_shape)


# ------------------------- demo / check -------------------------

def _reference(x, *, x_intercept, y_intercept, power, divisor):
    m = y_intercept / x_intercept
    linear_piece = jnp.where((x >= x_intercept) & (x <= 0.0),
                             m * x + y_intercept, 0.0)
    poly_piece = jnp.where(x > 0.0,
                           jnp.power(jnp.maximum(x, 0.0), power) + y_intercept,
                           0.0)
    return (poly_piece + linear_piece) / divisor


if __name__ == "__main__":
    # Deterministic "config" (mirrors Polymax.__init__); x_intercept chosen so
    # the demo input exercises all three regions.
    params = dict(x_intercept=-1.5, y_intercept=1.0, power=2.0, divisor=1000.0)

    key = jax.random.PRNGKey(0)
    k0, k1, k2 = jax.random.split(key, 3)

    # Attention-score-like input: (batch=2, heads=4, T=16, T=16) — lane-aligned
    # (size divisible by 128) so the no-pad fast path is used.
    x = jax.random.normal(k0, (2, 4, 16, 16), dtype=jnp.float32)
    out = jax.block_until_ready(polymax(x, **params))
    ref = _reference(x, **params)
    assert out.shape == x.shape and out.dtype == x.dtype
    assert jnp.allclose(out, ref, rtol=1e-6, atol=1e-7), "mismatch (aligned)"

    # Multi-step grid with a ragged last row-block (rows not divisible by tr).
    x_b = jax.random.normal(k1, (100, 256), dtype=jnp.float32)
    out_b = jax.block_until_ready(polymax(x_b, **params))
    assert jnp.allclose(out_b, _reference(x_b, **params),
                        rtol=1e-6, atol=1e-7), "mismatch (partial block)"

    # Size not divisible by 128: exercises the pad/slice fallback path.
    x_c = jax.random.normal(k2, (5, 333), dtype=jnp.float32)
    out_c = jax.block_until_ready(polymax(x_c, **params))
    assert jnp.allclose(out_c, _reference(x_c, **params),
                        rtol=1e-6, atol=1e-7), "mismatch (ragged fallback)"

    print("KERNEL_OK")
</pallas_src>

<mosaic_0001>
module attributes {stable_mosaic.version = 11 : i64} {
  func.func @_polymax_kernel(%arg0: i32, %arg1: memref<1x2048xf32, #tpu.memory_space<vmem>>, %arg2: memref<1x2048xf32, #tpu.memory_space<vmem>>) attributes {dimension_semantics = [#tpu.dimension_semantics<parallel>], iteration_bounds = array<i64: 1>, scalar_prefetch = 0 : i64, scratch_operands = 0 : i64, tpu.core_type = #tpu.core_type<tc>, window_params = [{transform_indices = @transform_0, window_bounds = array<i64: 1, 2048>}, {transform_indices = @transform_1, window_bounds = array<i64: 1, 2048>}]} {
    %c0 = arith.constant 0 : index
    %c0_0 = arith.constant 0 : index
    %0 = vector.load %arg1[%c0, %c0_0] : memref<1x2048xf32, #tpu.memory_space<vmem>>, vector<1x2048xf32>
    %cst = arith.constant 0.000000e+00 : f32
    %1 = vector.broadcast %cst : f32 to vector<1x2048xf32>
    %2 = arith.maximumf %0, %1 : vector<1x2048xf32>
    %3 = arith.mulf %2, %2 : vector<1x2048xf32>
    %cst_1 = arith.constant 0.000000e+00 : f32
    %4 = vector.broadcast %cst_1 : f32 to vector<1x2048xf32>
    %5 = arith.cmpf ogt, %0, %4 : vector<1x2048xf32>
    %cst_2 = arith.constant 1.000000e+00 : f32
    %6 = vector.broadcast %cst_2 : f32 to vector<1x2048xf32>
    %7 = arith.addf %3, %6 : vector<1x2048xf32>
    %cst_3 = arith.constant -1.500000e+00 : f32
    %8 = vector.broadcast %cst_3 : f32 to vector<1x2048xf32>
    %9 = arith.cmpf oge, %0, %8 : vector<1x2048xf32>
    %cst_4 = arith.constant -0.666666686 : f32
    %10 = vector.broadcast %cst_4 : f32 to vector<1x2048xf32>
    %11 = arith.mulf %10, %0 : vector<1x2048xf32>
    %cst_5 = arith.constant 1.000000e+00 : f32
    %12 = vector.broadcast %cst_5 : f32 to vector<1x2048xf32>
    %13 = arith.addf %11, %12 : vector<1x2048xf32>
    %cst_6 = arith.constant 0.000000e+00 : f32
    %14 = vector.broadcast %cst_6 : f32 to vector<1x2048xf32>
    %15 = arith.select %9, %13, %14 : vector<1x2048xi1>, vector<1x2048xf32>
    %16 = arith.select %5, %7, %15 : vector<1x2048xi1>, vector<1x2048xf32>
    %cst_7 = arith.constant 1.000000e-03 : f32
    %17 = vector.broadcast %cst_7 : f32 to vector<1x2048xf32>
    %18 = arith.mulf %16, %17 : vector<1x2048xf32>
    %c0_8 = arith.constant 0 : index
    %c0_9 = arith.constant 0 : index
    %19 = vector.load %arg2[%c0_8, %c0_9] : memref<1x2048xf32, #tpu.memory_space<vmem>>, vector<1x2048xf32>
    tpu.vector_store %arg2[%c0_8, %c0_9], %18 {strides = array<i32>} : memref<1x2048xf32, #tpu.memory_space<vmem>>, vector<1x2048xf32>,
    return
  }
  func.func @transform_0(%arg0: i32) -> (i32, i32) {
    %c0_i32 = arith.constant 0 : i32
    %c0_i32_0 = arith.constant 0 : i32
    return %arg0, %c0_i32 : i32, i32
  }
  func.func @transform_1(%arg0: i32) -> (i32, i32) {
    %c0_i32 = arith.constant 0 : i32
    %c0_i32_0 = arith.constant 0 : i32
    return %arg0, %c0_i32 : i32, i32
  }
}

</mosaic_0001>

<bundles_post_ra>
// kernel: tpu_custom_call.1
= control target key start
LH: loop header
LB: loop body
LE: loop exit
PB: predicated region body
PF: predicated region fallthrough
CT: control target
= control target key end

     0   :  { %6 = vsyncpa [#allocation3], 0  ;;  %s146_s0 = inlined_call_operand.hbm [shape: f32[1,2048], index: 0, kind: input, shape index: {}]   ;;  %s147_s1 = inlined_call_operand.hbm [shape: f32[1,2048], index: 1, kind: output, shape index: {}]  }
   0x1   :  { %7 = vsyncpa [#allocation4], 0  ;;  %s110_s6 = smov [#allocation2]   ;;  %s62_s10 = scalar_lea.hbm %s146_s0, 256 }
   0x2   :  { %s14_s7 = sshll.u32 %s110_s6, 4  ;;  %p63_p0 = scmp.ne.s32.totalorder %s146_s0, %s62_s10  ;;  %s15_s7 = int_to_ptr.vmem [resolvable:$true] %s14_s7 }
   0x3   :  { %p66_p1 = scmp.lt.u32.totalorder %s62_s10, %s146_s0 }
   0x5   :  { %p68_p2 = pnand %p66_p1, %p63_p0 }
   0x7   :  { %71 = shalt.err (!%p68_p2)
}
   0x8   :  { %s72_s15 = scalar_lea.vmem %s15_s7, 256  ;;  %p77_p4 = scmp.lt.s32.totalorder %s15_s7, %s15_s7 }
   0x9   :  { %p73_p3 = scmp.ne.s32.totalorder %s15_s7, %s72_s15  ;;  %p78_p5 = scmp.lt.s32.totalorder %s72_s15, %s72_s15 }
   0xb   :  { %p79_p6 = por %p78_p5, %p77_p4 }
   0xd   :  { %p80_p7 = pnand %p79_p6, %p73_p3 }
   0xf   :  { %83 = shalt.err (!%p80_p7)
}
  0x10   :  { %17 = dma.hbm_to_vmem [thread:$0]  %s146_s0, 256, %s15_s7, [#allocation3]  }
  0x11   :  { %106 = dma.done.wait [#allocation3], 256  }
  0x12   :  { %107 = vsyncadd [#allocation3], 4294967040  ;;  %v21_v0 = vld [vmem:[#allocation2] sm:$0xff]  ;;  %v22_v1 = vld [vmem:[#allocation2 + $0x8] sm:$0xff]  ;;  %s111_s0 = smov [#allocation5]  }
  0x13   :  { %v23_v2 = vmax.f32 %v21_v0, 0.0  ;;  %v33_v3 = vmul.f32 -0.6666667, %v21_v0  ;;  %vm31_vm0 = vcmp.ge.f32.partialorder %v21_v0, -1.5  ;;  %v24_v4 = vmax.f32 %v22_v1, 0.0  ;;  %s51_s18 = sshll.u32 %s111_s0, 4  ;;  %s52_s18 = int_to_ptr.vmem [resolvable:$true] %s51_s18 }
  0x14   :  { %v34_v5 = vmul.f32 -0.6666667, %v22_v1  ;;  %vm32_vm1 = vcmp.ge.f32.partialorder %v22_v1, -1.5  ;;  %vm27_vm2 = vcmp.gt.f32.partialorder %v21_v0, 0.0  ;;  %vm28_vm3 = vcmp.gt.f32.partialorder %v22_v1, 0.0  ;;  %s84_s19 = scalar_lea.vmem %s52_s18, 256  ;;  %p89_p9 = scmp.lt.s32.totalorder %s52_s18, %s52_s18 }
  0x15   :  { %v25_v6 = vmul.f32 %v23_v2, %v23_v2  ;;  %v35_v7 = vadd.f32 1.0, %v33_v3  ;;  %v26_v8 = vmul.f32 %v24_v4, %v24_v4  ;;  %p85_p8 = scmp.ne.s32.totalorder %s52_s18, %s84_s19  ;;  %p90_p10 = scmp.lt.s32.totalorder %s84_s19, %s84_s19 }
  0x16   :  { %v36_v9 = vadd.f32 1.0, %v34_v5 }
  0x17   :  { %v29_v10 = vadd.f32 1.0, %v25_v6  ;;  %v37_v11 = vsel %vm31_vm0, %v35_v7, 0.0  ;;  %v30_v12 = vadd.f32 1.0, %v26_v8  ;;  %p91_p11 = por %p90_p10, %p89_p9 }
  0x18   :  { %v38_v13 = vsel %vm32_vm1, %v36_v9, 0.0 }
  0x19   :  { %v39_v14 = vsel %vm27_vm2, %v29_v10, %v37_v11  ;;  %v40_v16 = vsel %vm28_vm3, %v30_v12, %v38_v13  ;;  %p92_p12 = pnand %p91_p11, %p85_p8 }
  0x1a   :  { %v41_v15 = vmul.f32 0.001, %v39_v14  ;;  %v42_v17 = vmul.f32 0.001, %v40_v16 }
  0x1c   :  { %43 = vst [vmem:[#allocation5] sm:$0xff] %v41_v15  ;;  %44 = vst [vmem:[#allocation5 + $0x8] sm:$0xff] %v42_v17 }
  0x1d   :  { %95 = shalt.err (!%p92_p12)
}
  0x1e   :  { %s96_s22 = scalar_lea.hbm %s147_s1, 256 }
  0x1f   :  { %p97_p13 = scmp.ne.s32.totalorder %s147_s1, %s96_s22  ;;  %p100_p0 = scmp.lt.u32.totalorder %s96_s22, %s147_s1 }
  0x21   :  { %p102_p1 = pnand %p100_p0, %p97_p13 }
  0x23   :  { %105 = shalt.err (!%p102_p1)
}
  0x24   :  { %54 = dma.vmem_to_hbm [thread:$0]  %s52_s18, 256, %s147_s1, [#allocation4]  }
  0x25   :  { %108 = dma.done.wait [#allocation4], 256  }
  0x26   :  { %109 = vsyncadd [#allocation4], 4294967040 }
  0x27   :  { %58 = vsyncpa [#allocation3], 1 }
  0x28   :  { %59 = vsyncpa [#allocation4], 1 }

</bundles_post_ra>
